<compile_context>
chip_gen: v6e
topology: v6e:2x2x1
jax: 0.10.0
libtpu: 0.0.40
codegen_flags: <defaults>
</compile_context>

<pallas_src>
import jax
import jax.numpy as jnp
from jax.experimental import pallas as pl
from jax.experimental.pallas import tpu as pltpu

MLP_HID = 300   # fixed by the module (emb2vector hidden)
VEC_DIM = 200   # fixed by the module (matrix is 200x200)
LANE = 128


def _rup(n, m=LANE):
    return ((n + m - 1) // m) * m


def _pad_to(x, shape):
    pads = [(0, t - s) for s, t in zip(x.shape, shape)]
    if any(p[1] for p in pads):
        return jnp.pad(x, pads)
    return x


def sr_matcher_kernel(qw_ref, w1_ref, b1_ref, w2_ref, b2_ref,
                      memt_ref, matt_ref, srl_ref, out_ref):
    bb, s, _ = out_ref.shape                 # (Bb, S, V_PAD)
    bf16 = jnp.bfloat16

    # ---- emb2vector MLP, folded over all Bb*S rows (large-M MXU tiles) ----
    h = jnp.dot(qw_ref[...], w1_ref[...],
                preferred_element_type=jnp.float32) + b1_ref[...]
    h = jnp.maximum(h, 0.0)                                          # (Bb*S, H_PAD)
    qv = jnp.dot(h.astype(bf16), w2_ref[...],
                 preferred_element_type=jnp.float32) + b2_ref[...]
    qv = jnp.maximum(qv, 0.0)                                        # (Bb*S, D_PAD)

    # ---- scores = qv @ (mem @ matrix)^T == (qv @ matrix^T) @ mem^T ----
    # matrix^T (matt) and mem^T (memt) are pre-transposed in the wrapper, so
    # every contraction below is a plain (M,K)@(K,N) — no in-kernel transposes.
    z = jnp.dot(qv.astype(bf16), matt_ref[...],
                preferred_element_type=jnp.float32)                  # (Bb*S, D_PAD)
    z3 = z.reshape(bb, s, z.shape[-1]).astype(bf16)                  # (Bb, S, D_PAD)
    scores = jnp.einsum('bsd,bdn->bsn', z3, memt_ref[...],
                        preferred_element_type=jnp.float32)          # (Bb, S, So)

    # ---- softmax over the (unpadded) memory axis So, f32 on the VPU/EUP ----
    m = jnp.max(scores, axis=-1, keepdims=True)
    e = jnp.exp(scores - m)
    p = e * pl.reciprocal(jnp.sum(e, axis=-1, keepdims=True), approx=True)

    # ---- output_word = softmax(scores) @ SRL_probs (lane-dense V_PAD out) ----
    out = jnp.einsum('bsn,bnv->bsv', p, srl_ref[...],
                     preferred_element_type=jnp.float32)             # (Bb, S, V_PAD)
    out_ref[...] = out.astype(out_ref.dtype)


def sr_matcher_forward(memory_vectors, srl_probs, pretrained_emb, word_id_emb, params):
    """params = (w1, b1, w2, b2, matrix); returns (B*S, V) like the torch module."""
    w1, b1, w2, b2, matrix = params
    B, So, _ = memory_vectors.shape
    S = pretrained_emb.shape[1]
    V = srl_probs.shape[-1]
    bf16 = jnp.bfloat16

    E = pretrained_emb.shape[-1] + word_id_emb.shape[-1]
    E_P, H_P, D_P, V_P = _rup(E), _rup(MLP_HID), _rup(VEC_DIM), _rup(V)

    # glue: concat of the two embeddings; dropout is identity in eval.
    qw = jnp.concatenate([pretrained_emb, word_id_emb], axis=2)      # (B, S, E)
    qw = _pad_to(qw, (B, S, E_P)).reshape(B * S, E_P).astype(bf16)   # folded rows

    w1_p = _pad_to(w1, (E_P, H_P)).astype(bf16)
    b1_p = _pad_to(b1, (H_P,)).reshape(1, H_P).astype(jnp.float32)
    w2_p = _pad_to(w2, (H_P, D_P)).astype(bf16)
    b2_p = _pad_to(b2, (D_P,)).reshape(1, D_P).astype(jnp.float32)
    matt = _pad_to(matrix, (D_P, D_P)).T.astype(bf16)                # matrix^T, padded
    memt = jnp.swapaxes(_pad_to(memory_vectors, (B, So, D_P)), 1, 2).astype(bf16)  # (B, D_P, So)
    srl_p = _pad_to(srl_probs, (B, So, V_P)).astype(bf16)            # (B, So, V_P)

    # 2 parallel grid steps (v7x megacore) with B/2 batches per step; fall back to
    # a single step when the folded row-block would violate the sublane rule.
    GRID = 2 if (B % 2 == 0 and ((B // 2) * S) % 8 == 0) else 1
    BB = B // GRID

    # NOTE: weight specs use constant index_maps (resident across steps). At
    # production sizes, pipeline_mode=pl.Buffered(1) would halve their VMEM.
    out = pl.pallas_call(
        sr_matcher_kernel,
        out_shape=jax.ShapeDtypeStruct((B, S, V_P), jnp.float32),
        grid_spec=pltpu.PrefetchScalarGridSpec(
            num_scalar_prefetch=0,
            grid=(GRID,),
            in_specs=[
                pl.BlockSpec((BB * S, E_P), lambda i: (i, 0)),       # query_word (folded)
                pl.BlockSpec((E_P, H_P), lambda i: (0, 0)),          # W1
                pl.BlockSpec((1, H_P), lambda i: (0, 0)),            # b1
                pl.BlockSpec((H_P, D_P), lambda i: (0, 0)),          # W2
                pl.BlockSpec((1, D_P), lambda i: (0, 0)),            # b2
                pl.BlockSpec((BB, D_P, So), lambda i: (i, 0, 0)),    # mem^T
                pl.BlockSpec((D_P, D_P), lambda i: (0, 0)),          # matrix^T
                pl.BlockSpec((BB, So, V_P), lambda i: (i, 0, 0)),    # SRL_probs
            ],
            out_specs=pl.BlockSpec((BB, S, V_P), lambda i: (i, 0, 0)),
        ),
        compiler_params=pltpu.CompilerParams(
            dimension_semantics=("parallel",),
            vmem_limit_bytes=32 * 1024 * 1024),
    )(qw, w1_p, b1_p, w2_p, b2_p, memt, matt, srl_p)

    return out[:, :, :V].reshape(B * S, V)


def reference_mixed(memory_vectors, srl_probs, pretrained_emb, word_id_emb, params):
    """Pure-JAX reference with the same bf16-operand / f32-accumulate scheme."""
    w1, b1, w2, b2, matrix = params
    bf16 = jnp.bfloat16
    B, So, _ = memory_vectors.shape
    S = pretrained_emb.shape[1]
    V = srl_probs.shape[-1]
    qw = jnp.concatenate([pretrained_emb, word_id_emb], axis=2).astype(bf16)
    h = jnp.maximum(jnp.einsum('bse,eh->bsh', qw, w1.astype(bf16),
                               preferred_element_type=jnp.float32) + b1, 0.0)
    qv = jnp.maximum(jnp.einsum('bsh,hd->bsd', h.astype(bf16), w2.astype(bf16),
                                preferred_element_type=jnp.float32) + b2, 0.0)
    z = jnp.einsum('bsd,ed->bse', qv.astype(bf16), matrix.astype(bf16),
                   preferred_element_type=jnp.float32)               # qv @ matrix^T
    scores = jnp.einsum('bse,bne->bsn', z.astype(bf16), memory_vectors.astype(bf16),
                        preferred_element_type=jnp.float32)
    scores = jax.nn.softmax(scores, axis=-1)
    out = jnp.einsum('bsn,bnv->bsv', scores, srl_probs.astype(bf16),
                     preferred_element_type=jnp.float32)
    return out.reshape(B * S, V)


def reference_f32(memory_vectors, srl_probs, pretrained_emb, word_id_emb, params):
    """Pure-f32 reference mirroring the torch forward (para=False, eval)."""
    w1, b1, w2, b2, matrix = params
    B, So, _ = memory_vectors.shape
    S = pretrained_emb.shape[1]
    V = srl_probs.shape[-1]
    qw = jnp.concatenate([pretrained_emb, word_id_emb], axis=2)
    h = jax.nn.relu(qw @ w1 + b1)
    qv = jax.nn.relu(h @ w2 + b2)
    y = jnp.einsum('bnd,de->bne', memory_vectors, matrix)
    scores = jax.nn.softmax(jnp.einsum('bsd,bnd->bsn', qv, y), axis=-1)
    out = jnp.einsum('bsn,bnv->bsv', scores, srl_probs)
    return out.reshape(B * S, V)


if __name__ == "__main__":
    # small, module-consistent shapes
    B = 2                 # batch_size
    S = 8                 # seq_len (query side)
    So = 8                # seq_len_origin (memory side)
    PRETRAIN = 16         # pretrain_emb_size
    FLAG = 16             # flag_embedding_size
    V = 8                 # target_vocab_size
    E = PRETRAIN + FLAG

    key = jax.random.PRNGKey(0)
    k = jax.random.split(key, 10)

    # deterministic parameter init (`matrix` is zeros in torch — use small random
    # values here for a non-degenerate test)
    w1 = jax.random.normal(k[0], (E, MLP_HID), jnp.float32) * 0.08
    b1 = jax.random.normal(k[1], (MLP_HID,), jnp.float32) * 0.01
    w2 = jax.random.normal(k[2], (MLP_HID, VEC_DIM), jnp.float32) * 0.08
    b2 = jax.random.normal(k[3], (VEC_DIM,), jnp.float32) * 0.01
    matrix = jax.random.normal(k[4], (VEC_DIM, VEC_DIM), jnp.float32) * 0.02
    params = (w1, b1, w2, b2, matrix)

    memory_vectors = jax.random.normal(k[5], (B, So, VEC_DIM), jnp.float32)
    srl_logits = jax.random.normal(k[6], (B, So, V), jnp.float32)
    srl_probs = jax.nn.softmax(srl_logits, axis=-1)
    pretrained_emb = jax.random.normal(k[7], (B, S, PRETRAIN), jnp.float32)
    word_id_emb = jax.random.normal(k[8], (B, S, FLAG), jnp.float32)

    out = sr_matcher_forward(memory_vectors, srl_probs, pretrained_emb, word_id_emb, params)
    out = jax.block_until_ready(out)

    ref_mix = reference_mixed(memory_vectors, srl_probs, pretrained_emb, word_id_emb, params)
    ref_f32 = reference_f32(memory_vectors, srl_probs, pretrained_emb, word_id_emb, params)

    assert out.shape == (B * S, V), out.shape
    assert jnp.allclose(out, ref_mix, atol=5e-3, rtol=5e-3), \
        float(jnp.max(jnp.abs(out - ref_mix)))
    assert jnp.allclose(out, ref_f32, atol=7e-2, rtol=7e-2), \
        float(jnp.max(jnp.abs(out - ref_f32)))

    print("KERNEL_OK")
</pallas_src>

<mosaic_0001>
module attributes {stable_mosaic.version = 11 : i64} {
  func.func @sr_matcher_kernel(%arg0: i32, %arg1: memref<8x128xbf16, #tpu.memory_space<vmem>>, %arg2: memref<128x384xbf16, #tpu.memory_space<vmem>>, %arg3: memref<1x384xf32, #tpu.memory_space<vmem>>, %arg4: memref<384x256xbf16, #tpu.memory_space<vmem>>, %arg5: memref<1x256xf32, #tpu.memory_space<vmem>>, %arg6: memref<1x256x8xbf16, #tpu.memory_space<vmem>>, %arg7: memref<256x256xbf16, #tpu.memory_space<vmem>>, %arg8: memref<1x8x128xbf16, #tpu.memory_space<vmem>>, %arg9: memref<1x8x128xf32, #tpu.memory_space<vmem>>) attributes {dimension_semantics = [#tpu.dimension_semantics<parallel>], iteration_bounds = array<i64: 2>, scalar_prefetch = 0 : i64, scratch_operands = 0 : i64, tpu.core_type = #tpu.core_type<tc>, window_params = [{transform_indices = @transform_0, window_bounds = array<i64: 8, 128>}, {pipeline_mode = #tpu.pipeline_mode<synchronous>, transform_indices = @transform_1, window_bounds = array<i64: 128, 384>}, {pipeline_mode = #tpu.pipeline_mode<synchronous>, transform_indices = @transform_2, window_bounds = array<i64: 1, 384>}, {pipeline_mode = #tpu.pipeline_mode<synchronous>, transform_indices = @transform_3, window_bounds = array<i64: 384, 256>}, {pipeline_mode = #tpu.pipeline_mode<synchronous>, transform_indices = @transform_4, window_bounds = array<i64: 1, 256>}, {transform_indices = @transform_5, window_bounds = array<i64: 1, 256, 8>}, {pipeline_mode = #tpu.pipeline_mode<synchronous>, transform_indices = @transform_6, window_bounds = array<i64: 256, 256>}, {transform_indices = @transform_7, window_bounds = array<i64: 1, 8, 128>}, {transform_indices = @transform_8, window_bounds = array<i64: 1, 8, 128>}]} {
    %c0 = arith.constant 0 : index
    %c0_0 = arith.constant 0 : index
    %0 = vector.load %arg1[%c0, %c0_0] : memref<8x128xbf16, #tpu.memory_space<vmem>>, vector<8x128xbf16>
    %c0_1 = arith.constant 0 : index
    %c0_2 = arith.constant 0 : index
    %1 = vector.load %arg2[%c0_1, %c0_2] : memref<128x384xbf16, #tpu.memory_space<vmem>>, vector<128x384xbf16>
    %cst = arith.constant dense<0.000000e+00> : vector<8x384xf32>
    %2 = tpu.matmul %0, %1, %cst {dimension_numbers = #tpu.dot_dimension_numbers<[1], [0], [0], [1], [0, 0, 1, 1], [], []>} : vector<8x128xbf16>, vector<128x384xbf16>, vector<8x384xf32> -> vector<8x384xf32>
    %c0_3 = arith.constant 0 : index
    %c0_4 = arith.constant 0 : index
    %3 = vector.load %arg3[%c0_3, %c0_4] : memref<1x384xf32, #tpu.memory_space<vmem>>, vector<1x384xf32>
    %4 = vector.broadcast %3 : vector<1x384xf32> to vector<8x384xf32>
    %5 = arith.addf %2, %4 : vector<8x384xf32>
    %cst_5 = arith.constant 0.000000e+00 : f32
    %6 = vector.broadcast %cst_5 : f32 to vector<8x384xf32>
    %7 = arith.maximumf %5, %6 : vector<8x384xf32>
    %8 = arith.truncf %7 : vector<8x384xf32> to vector<8x384xbf16>
    %c0_6 = arith.constant 0 : index
    %c0_7 = arith.constant 0 : index
    %9 = vector.load %arg4[%c0_6, %c0_7] : memref<384x256xbf16, #tpu.memory_space<vmem>>, vector<384x256xbf16>
    %cst_8 = arith.constant dense<0.000000e+00> : vector<8x256xf32>
    %10 = tpu.matmul %8, %9, %cst_8 {dimension_numbers = #tpu.dot_dimension_numbers<[1], [0], [0], [1], [0, 0, 1, 1], [], []>} : vector<8x384xbf16>, vector<384x256xbf16>, vector<8x256xf32> -> vector<8x256xf32>
    %c0_9 = arith.constant 0 : index
    %c0_10 = arith.constant 0 : index
    %11 = vector.load %arg5[%c0_9, %c0_10] : memref<1x256xf32, #tpu.memory_space<vmem>>, vector<1x256xf32>
    %12 = vector.broadcast %11 : vector<1x256xf32> to vector<8x256xf32>
    %13 = arith.addf %10, %12 : vector<8x256xf32>
    %cst_11 = arith.constant 0.000000e+00 : f32
    %14 = vector.broadcast %cst_11 : f32 to vector<8x256xf32>
    %15 = arith.maximumf %13, %14 : vector<8x256xf32>
    %16 = arith.truncf %15 : vector<8x256xf32> to vector<8x256xbf16>
    %c0_12 = arith.constant 0 : index
    %c0_13 = arith.constant 0 : index
    %17 = vector.load %arg7[%c0_12, %c0_13] : memref<256x256xbf16, #tpu.memory_space<vmem>>, vector<256x256xbf16>
    %cst_14 = arith.constant dense<0.000000e+00> : vector<8x256xf32>
    %18 = tpu.matmul %16, %17, %cst_14 {dimension_numbers = #tpu.dot_dimension_numbers<[1], [0], [0], [1], [0, 0, 1, 1], [], []>} : vector<8x256xbf16>, vector<256x256xbf16>, vector<8x256xf32> -> vector<8x256xf32>
    %19 = vector.shape_cast %18 : vector<8x256xf32> to vector<1x8x256xf32>
    %20 = arith.truncf %19 : vector<1x8x256xf32> to vector<1x8x256xbf16>
    %c0_15 = arith.constant 0 : index
    %c0_16 = arith.constant 0 : index
    %c0_17 = arith.constant 0 : index
    %21 = vector.load %arg6[%c0_15, %c0_16, %c0_17] : memref<1x256x8xbf16, #tpu.memory_space<vmem>>, vector<1x256x8xbf16>
    "tpu.trace_start"() <{level = 10 : i32, message = "bsd,bdn->bsn"}> : () -> ()
    %cst_18 = arith.constant dense<0.000000e+00> : vector<1x8x8xf32>
    %22 = tpu.matmul %20, %21, %cst_18 {dimension_numbers = #tpu.dot_dimension_numbers<[2], [1], [1], [2], [0, 0, 0, 1, 1, 2], [0], [0]>} : vector<1x8x256xbf16>, vector<1x256x8xbf16>, vector<1x8x8xf32> -> vector<1x8x8xf32>
    "tpu.trace_stop"() : () -> ()
    %cst_19 = arith.constant dense<0xFF800000> : vector<1x8xf32>
    %23 = vector.multi_reduction <maximumf>, %22, %cst_19 [2] : vector<1x8x8xf32> to vector<1x8xf32>
    %24 = vector.shape_cast %23 : vector<1x8xf32> to vector<1x8x1xf32>
    %25 = vector.broadcast %24 : vector<1x8x1xf32> to vector<1x8x8xf32>
    %26 = arith.subf %22, %25 : vector<1x8x8xf32>
    %27 = math.exp %26 : vector<1x8x8xf32>
    %cst_20 = arith.constant dense<0.000000e+00> : vector<1x8xf32>
    %28 = vector.multi_reduction <add>, %27, %cst_20 [2] : vector<1x8x8xf32> to vector<1x8xf32>
    %29 = vector.shape_cast %28 : vector<1x8xf32> to vector<1x8x1xf32>
    %30 = tpu.reciprocal %29 {approx = true} : vector<1x8x1xf32> -> vector<1x8x1xf32>
    %31 = vector.broadcast %30 : vector<1x8x1xf32> to vector<1x8x8xf32>
    %32 = arith.mulf %27, %31 : vector<1x8x8xf32>
    %c0_21 = arith.constant 0 : index
    %c0_22 = arith.constant 0 : index
    %c0_23 = arith.constant 0 : index
    %33 = vector.load %arg8[%c0_21, %c0_22, %c0_23] : memref<1x8x128xbf16, #tpu.memory_space<vmem>>, vector<1x8x128xbf16>
    "tpu.trace_start"() <{level = 10 : i32, message = "bsn,bnv->bsv"}> : () -> ()
    %cst_24 = arith.constant dense<0.000000e+00> : vector<1x8x128xf32>
    %34 = tpu.matmul %32, %33, %cst_24 {dimension_numbers = #tpu.dot_dimension_numbers<[2], [1], [1], [2], [0, 0, 0, 1, 1, 2], [0], [0]>} : vector<1x8x8xf32>, vector<1x8x128xbf16>, vector<1x8x128xf32> -> vector<1x8x128xf32>
    "tpu.trace_stop"() : () -> ()
    %c0_25 = arith.constant 0 : index
    %c0_26 = arith.constant 0 : index
    %c0_27 = arith.constant 0 : index
    %35 = vector.load %arg9[%c0_25, %c0_26, %c0_27] : memref<1x8x128xf32, #tpu.memory_space<vmem>>, vector<1x8x128xf32>
    tpu.vector_store %arg9[%c0_25, %c0_26, %c0_27], %34 {strides = array<i32>} : memref<1x8x128xf32, #tpu.memory_space<vmem>>, vector<1x8x128xf32>,
    return
  }
  func.func @transform_0(%arg0: i32) -> (i32, i32) {
    %c0_i32 = arith.constant 0 : i32
    %c0_i32_0 = arith.constant 0 : i32
    return %arg0, %c0_i32 : i32, i32
  }
  func.func @transform_1(%arg0: i32) -> (i32, i32) {
    %c0_i32 = arith.constant 0 : i32
    %c0_i32_0 = arith.constant 0 : i32
    %c0_i32_1 = arith.constant 0 : i32
    return %c0_i32, %c0_i32_0 : i32, i32
  }
  func.func @transform_2(%arg0: i32) -> (i32, i32) {
    %c0_i32 = arith.constant 0 : i32
    %c0_i32_0 = arith.constant 0 : i32
    %c0_i32_1 = arith.constant 0 : i32
    return %c0_i32, %c0_i32_0 : i32, i32
  }
  func.func @transform_3(%arg0: i32) -> (i32, i32) {
    %c0_i32 = arith.constant 0 : i32
    %c0_i32_0 = arith.constant 0 : i32
    %c0_i32_1 = arith.constant 0 : i32
    return %c0_i32, %c0_i32_0 : i32, i32
  }
  func.func @transform_4(%arg0: i32) -> (i32, i32) {
    %c0_i32 = arith.constant 0 : i32
    %c0_i32_0 = arith.constant 0 : i32
    %c0_i32_1 = arith.constant 0 : i32
    return %c0_i32, %c0_i32_0 : i32, i32
  }
  func.func @transform_5(%arg0: i32) -> (i32, i32, i32) {
    %c0_i32 = arith.constant 0 : i32
    %c0_i32_0 = arith.constant 0 : i32
    %c0_i32_1 = arith.constant 0 : i32
    return %arg0, %c0_i32, %c0_i32_0 : i32, i32, i32
  }
  func.func @transform_6(%arg0: i32) -> (i32, i32) {
    %c0_i32 = arith.constant 0 : i32
    %c0_i32_0 = arith.constant 0 : i32
    %c0_i32_1 = arith.constant 0 : i32
    return %c0_i32, %c0_i32_0 : i32, i32
  }
  func.func @transform_7(%arg0: i32) -> (i32, i32, i32) {
    %c0_i32 = arith.constant 0 : i32
    %c0_i32_0 = arith.constant 0 : i32
    %c0_i32_1 = arith.constant 0 : i32
    return %arg0, %c0_i32, %c0_i32_0 : i32, i32, i32
  }
  func.func @transform_8(%arg0: i32) -> (i32, i32, i32) {
    %c0_i32 = arith.constant 0 : i32
    %c0_i32_0 = arith.constant 0 : i32
    %c0_i32_1 = arith.constant 0 : i32
    return %arg0, %c0_i32, %c0_i32_0 : i32, i32, i32
  }
}

</mosaic_0001>

<bundles_post_ra>
// kernel: tpu_custom_call.1
= control target key start
LH: loop header
LB: loop body
LE: loop exit
PB: predicated region body
PF: predicated region fallthrough
CT: control target
= control target key end

     0   :  { %13 = vsyncpa [#allocation3], 0  ;;  %s2519_s0 = inlined_call_operand.vmem [shape: bf16[16,128], index: 0, kind: input, shape index: {}]   ;;  %s2520_s1 = inlined_call_operand.hbm [shape: bf16[128,384], index: 1, kind: input, shape index: {}]   ;;  %s2521_s2 = inlined_call_operand.vmem [shape: f32[1,384], index: 2, kind: input, shape index: {}]   ;;  %s2522_s3 = inlined_call_operand.hbm [shape: bf16[384,256], index: 3, kind: input, shape index: {}]   ;;  %s2523_s4 = inlined_call_operand.vmem [shape: f32[1,256], index: 4, kind: input, shape index: {}]   ;;  %s2524_s5 = inlined_call_operand.vmem [shape: bf16[2,256,8], index: 5, kind: input, shape index: {}]   ;;  %s2525_s6 = inlined_call_operand.vmem [shape: bf16[256,256], index: 6, kind: input, shape index: {}]   ;;  %s2526_s7 = inlined_call_operand.vmem [shape: bf16[2,8,128], index: 7, kind: input, shape index: {}]   ;;  %s2527_s8 = inlined_call_operand.hbm [shape: f32[2,8,128], index: 8, kind: output, shape index: {}]  }
   0x1   :  { %14 = vsyncpa [#allocation6], 0 }
   0x2   :  { %15 = vsyncpa [#allocation4], 0 }
   0x3   :  { %17 = vsyncpa [#allocation4 + $0x1], 0  ;;  %s2214_s27 = smov 0   ;;  %s2216_s28 = smov 0  }
   0x4   :  { %s2218_s29 = smov 0   ;;  %s2220_s30 = smov 0  }
   0x5 LB: > { %s2235_s9 = sadd.s32 4294967295, %s2157_s30   ;;  %s1601_s10 = sadd.s32 4294967294, %s2157_s30   ;;  %s2157_s30 = sphi %s2220_s30, %s2541_s30   ;;  %s2153_s29 = sphi %s2218_s29, %s2540_s29   ;;  %s2149_s28 = sphi %s2216_s28, %s2539_s28   ;;  %s2145_s27 = sphi %s2214_s27, %s2538_s27  }
   0x6   : > { %s2239_s11 = sadd.s32 1, %s2157_s30   ;;  %s213_s12 = sadd.s32 1, %s2153_s29 }
   0x7   : > { %s210_s13 = ssub.s32 %s2157_s30, %s2239_s11  ;;  %p223_p0 = scmp.ne.s32.totalorder %s2153_s29, %s2149_s28 }
   0x8   : > { %p211_p1 = scmp.eq.s32.totalorder %s210_s13, 0  ;;  %p224_p2 = scmp.eq.s32.totalorder %s2235_s9, 1 }
   0x9   : > { %p229_p3 = scmp.ne.s32.totalorder %s2149_s28, %s2145_s27  ;;  %p230_p4 = scmp.eq.s32.totalorder %s1601_s10, 1 }
   0xa   : > { %s2250_s14 = scalar_select %p211_p1, %s2153_s29, %s213_s12  }
   0xb   : > { %p2252_p5 = por %p224_p2, %p223_p0  ;;  %p2256_p6 = por %p230_p4, %p229_p3 }
   0xc   : > { %p1602_p7 = scmp.ge.s32.totalorder %s2157_s30, 1  ;;  %p237_p8 = scmp.lt.s32.totalorder %s2157_s30, 3 }
   0xd   : > { %s2530_s16 = scalar_select %p2256_p6, 1, 0 }
   0xe   : > { %p2528_p9 = scmp.eq.s32.totalorder %s2235_s9, 0  ;;  %p2263_p10 = pnand %p1602_p7, %p237_p8 }
   0xf   : > { %s2159_s18 = smov [#allocation2]   ;;  %s2160_s21 = smov [#allocation5]  }
  0x10   : > { %s249_s19 = sshll.u32 %s2159_s18, 4  ;;  %p1808_p11 = pneg %p2263_p10  ;;  %s250_s19 = int_to_ptr.vmem [resolvable:$true] %s249_s19 }
  0x11   : > { %s265_s22 = sshll.u32 %s2160_s21, 4  ;;  %s2048_s23 = scalar_lea.vmem %s250_s19, 3072  ;;  %s266_s22 = int_to_ptr.vmem [resolvable:$true] %s265_s22 }
  0x12   : > { %p2271_p12 = pnand %p2528_p9, %p1808_p11  ;;  %p2049_p0 = scmp.ne.s32.totalorder %s250_s19, %s2048_s23 }
  0x13   : > { %p2056_p3 = scmp.lt.s32.totalorder %s250_s19, %s250_s19  ;;  %p2057_p4 = scmp.lt.s32.totalorder %s2048_s23, %s2048_s23 }
  0x14   : > { %p2039_p13 = pneg %p2271_p12 }
  0x15   : > { %p2058_p7 = por %p2057_p4, %p2056_p3 }
  0x16   : > { %p2051_p1 = pnand %p2049_p0, %p2039_p13 }
  0x18   : > { %p2052_p2 = pneg %p2051_p1 }
  0x1a   : > { %p2059_p8 = pnand %p2058_p7, %p2052_p2 }
  0x1c   : > { %2062 = shalt.err (!%p2059_p8)
}
  0x1d   : > { %s2161_s24 = smov 192   ;;  %s2162_s25 = smov 12  }
  0x1e   : > { %1811 = dma.hbm_to_vmem [thread:$0]  (!%p2271_p12), %s2520_s1, 3072, %s250_s19, [#allocation3], %s2161_s24, %s2161_s24, %s2162_s25  }
  0x1f   : > { %s2074_s12 = scalar_lea.vmem %s266_s22, 6144  ;;  %p2082_p9 = scmp.lt.s32.totalorder %s266_s22, %s266_s22 }
  0x20   : > { %p2075_p11 = scmp.ne.s32.totalorder %s266_s22, %s2074_s12  ;;  %p2083_p6 = scmp.lt.s32.totalorder %s2074_s12, %s2074_s12 }
  0x22   : > { %p2077_p0 = pnand %p2075_p11, %p2039_p13  ;;  %p2084_p3 = por %p2083_p6, %p2082_p9 }
  0x24   : > { %p2078_p1 = pneg %p2077_p0 }
  0x26   : > { %p2085_p2 = pnand %p2084_p3, %p2078_p1 }
  0x28   : > { %2088 = shalt.err (!%p2085_p2)
}
  0x29   : > { %s2163_s13 = smov 128   ;;  %s2164_s18 = smov 8  }
  0x2a   : > { %1814 = dma.hbm_to_vmem [thread:$0]  (!%p2271_p12), %s2522_s3, 6144, %s266_s22, [#allocation6], %s2163_s13, %s2163_s13, %s2164_s18  }
  0x2b   : > { %309 = sbr.rel (%p2263_p10) target bundleno = 1406 (0x57e), region = 52  ;;  %p2533_p4 = scmp.eq.s32.totalorder (!%p2263_p10), %s2235_s9, 0 }
  0x30   : > { %2132 = dma.done.wait (%p2533_p4), [#allocation3], 3072   ;;  %p2534_p13 = pmov %p2533_p4 }
  0x31   : > { %p2535_p6 = pmov %p2533_p4 }
  0x32   : > { %2134 = vsyncadd (%p2534_p13), [#allocation3], 4294964224 }
  0x33   : > { %2136 = dma.done.wait (%p2535_p6), [#allocation6], 6144   ;;  %p2536_p9 = pmov %p2533_p4 }
  0x34   : > { %v2165_v0 = vmov 0.0   ;;  %vm2166_vm0 = vmmov 0   ;;  %v2167_v1 = vmov 0   ;;  %v1865_v2 = vld [vmem:[#allocation2 + $0xac] ss:$12 sps:$4 sm:$0xff]   ;;  %p355_p10 = scmp.lt.s32.totalorder %s2235_s9, 1 }
  0x35   : > { %2138 = vsyncadd (%p2536_p9), [#allocation6], 4294961152  ;;  %1773 = vmatprep.subr.bf16.mxu1 %v2165_v0  ;;  %1789 = vmatprep.mubr.msk.bf16.mxu1 %vm2166_vm0, %v2165_v0  ;;  %v1867_v3 = vld [vmem:[#allocation2 + $0xb0] ss:$12 sps:$4 sm:$0xff]   ;;  %v1868_v4 = vld [vmem:[#allocation2 + $0xa8] ss:$12 sps:$4 sm:$0xff]  }
  0x36   : > { %579 = vmatprep.mubr.bf16.mxu0 %v2167_v1  ;;  %547 = vmatprep.subr.bf16.mxu0 %v1865_v2  ;;  %v1869_v5 = vld [vmem:[#allocation2 + $0x94] ss:$12 sps:$4 sm:$0xff]   ;;  %v1871_v6 = vld [vmem:[#allocation2 + $0x98] ss:$12 sps:$4 sm:$0xff]   ;;  %v1872_v7 = vld [vmem:[#allocation2 + $0x90] ss:$12 sps:$4 sm:$0xff]  }
  0x37   : > { %1774 = vmatpush3.bf16.msra.mxu1 %v1867_v3  ;;  %548 = vmatpush1.bf16.msra.mxu0 %v1868_v4  ;;  %v1873_v8 = vld [vmem:[#allocation2 + $0x7c] ss:$12 sps:$4 sm:$0xff]   ;;  %v1875_v9 = vld [vmem:[#allocation2 + $0x80] ss:$12 sps:$4 sm:$0xff]   ;;  %v1876_v10 = vld [vmem:[#allocation2 + $0x78] ss:$12 sps:$4 sm:$0xff]  }
  0x38   : > { %1775 = vmatprep.subr.bf16.mxu1 %v2165_v0  ;;  %549 = vmatprep.subr.bf16.mxu0 %v1869_v5  ;;  %v1877_v11 = vld [vmem:[#allocation2 + $0x64] ss:$12 sps:$4 sm:$0xff]   ;;  %v1879_v12 = vld [vmem:[#allocation2 + $0x68] ss:$12 sps:$4 sm:$0xff]   ;;  %v1880_v13 = vld [vmem:[#allocation2 + $0x60] ss:$12 sps:$4 sm:$0xff]  }
  0x39   : > { %v1881_v14 = vld [vmem:[#allocation2 + $0x4c] ss:$12 sps:$4 sm:$0xff]   ;;  %v1883_v15 = vld [vmem:[#allocation2 + $0x50] ss:$12 sps:$4 sm:$0xff]   ;;  %v1884_v16 = vld [vmem:[#allocation2 + $0x48] ss:$12 sps:$4 sm:$0xff]  }
  0x3a   : > { %v1885_v17 = vld [vmem:[#allocation2 + $0x34] ss:$12 sps:$4 sm:$0xff]   ;;  %v1887_v18 = vld [vmem:[#allocation2 + $0x38] ss:$12 sps:$4 sm:$0xff]   ;;  %v1888_v19 = vld [vmem:[#allocation2 + $0x30] ss:$12 sps:$4 sm:$0xff]  }
  0x3b   : > { %1776 = vmatpush3.bf16.msra.mxu1 %v1871_v6  ;;  %550 = vmatpush1.bf16.msra.mxu0 %v1872_v7  ;;  %s2314_s17 = scalar_select %p355_p10, %s2235_s9, 1  ;;  %v1889_v20 = vld [vmem:[#allocation2 + $0x1c] ss:$12 sps:$4 sm:$0xff]   ;;  %v1891_v21 = vld [vmem:[#allocation2 + $0x20] ss:$12 sps:$4 sm:$0xff]   ;;  %vm1423_vm1 = vcmask 64512  }
  0x3c   : > { %1777 = vmatprep.subr.bf16.mxu1 %v2165_v0  ;;  %551 = vmatprep.subr.bf16.mxu0 %v1873_v8  ;;  %v1892_v22 = vld [vmem:[#allocation2 + $0x18] ss:$12 sps:$4 sm:$0xff]   ;;  %v1895_v24 = vld [vmem:[#allocation2 + $0x8] ss:$12 sps:$4 sm:$0xff]   ;;  %v1896_v25 = vld [vmem:[#allocation2] ss:$12 sps:$4 sm:$0xff]  }
  0x3d   : > { %s1610_s19 = sshll.u32 %s2314_s17, 2  ;;  %v1893_v23 = vld [vmem:[#allocation2 + $0x4] ss:$12 sps:$4 sm:$0xff]   ;;  %v1899_v26 = vld [vmem:[#allocation5 + $0x74] ss:$8 sps:$4 sm:$0xff]   ;;  %s1739_s25 = sshll.u32 %s2314_s17, 7 }
  0x3e   : > { %s358_s24 = scalar_lea.vmem %s2519_s0, %s1610_s19  ;;  %v1923_v28 = vld [vmem:[#allocation5 + $0x174] ss:$8 sps:$4 sm:$0xff]   ;;  %v1921_v29 = vld [vmem:[#allocation5 + $0x170] ss:$8 sps:$4 sm:$0xff]   ;;  %v1902_v31 = vld [vmem:[#allocation5 + $0x64] ss:$8 sps:$4 sm:$0xff]   ;;  %s2329_s12 = scalar_lea.vmem %s2524_s5, %s1739_s25 }
  0x3f   : > { %1778 = vmatpush3.bf16.msra.mxu1 %v1875_v9  ;;  %552 = vmatpush1.bf16.msra.mxu0 %v1876_v10  ;;  %v369_v27 = vld [vmem:[%s358_s24] sm:$0xf]  ;;  %v1897_v30 = vld [vmem:[#allocation5 + $0x70] ss:$8 sps:$4 sm:$0xff]   ;;  %v1929_v32 = vld [vmem:[#allocation5 + $0x164] ss:$8 sps:$4 sm:$0xff]   ;;  %s367_s10 = scalar_lea.vmem %s2526_s7, %s1610_s19 }
  0x40   : > { %1779 = vmatprep.subr.bf16.mxu1 %v2165_v0  ;;  %553 = vmatprep.subr.bf16.mxu0 %v1877_v11  ;;  %v1900_v33 = vld [vmem:[#allocation5 + $0x60] ss:$8 sps:$4 sm:$0xff]   ;;  %v1935_v35 = vld [vmem:[#allocation5 + $0x154] ss:$8 sps:$4 sm:$0xff]   ;;  %v1903_v37 = vld [vmem:[#allocation5 + $0x50] ss:$8 sps:$4 sm:$0xff]  }
  0x41   : > { %v1927_v34 = vld [vmem:[#allocation5 + $0x160] ss:$8 sps:$4 sm:$0xff]   ;;  %v1905_v36 = vld [vmem:[#allocation5 + $0x54] ss:$8 sps:$4 sm:$0xff]   ;;  %v1933_v38 = vld [vmem:[#allocation5 + $0x150] ss:$8 sps:$4 sm:$0xff]  }
  0x42   : > { %v1941_v39 = vld [vmem:[#allocation5 + $0x144] ss:$8 sps:$4 sm:$0xff]   ;;  %v1906_v41 = vld [vmem:[#allocation5 + $0x40] ss:$8 sps:$4 sm:$0xff]   ;;  %v1947_v43 = vld [vmem:[#allocation5 + $0x134] ss:$8 sps:$4 sm:$0xff]  }
  0x43   : > { %1780 = vmatpush3.bf16.msra.mxu1 %v1879_v12  ;;  %554 = vmatpush1.bf16.msra.mxu0 %v1880_v13  ;;  %v1908_v40 = vld [vmem:[#allocation5 + $0x44] ss:$8 sps:$4 sm:$0xff]   ;;  %v1939_v42 = vld [vmem:[#allocation5 + $0x140] ss:$8 sps:$4 sm:$0xff]   ;;  %v1911_v44 = vld [vmem:[#allocation5 + $0x34] ss:$8 sps:$4 sm:$0xff]   ;;  %v404_v13 = vlaneseq }
  0x44   : > { %1781 = vmatprep.subr.bf16.mxu1 %v2165_v0  ;;  %555 = vmatprep.subr.bf16.mxu0 %v1881_v14  ;;  %v1909_v45 = vld [vmem:[#allocation5 + $0x30] ss:$8 sps:$4 sm:$0xff]   ;;  %v1914_v47 = vld [vmem:[#allocation5 + $0x24] ss:$8 sps:$4 sm:$0xff]   ;;  %v1951_v49 = vld [vmem:[#allocation5 + $0x120] ss:$8 sps:$4 sm:$0xff]  }
  0x45   : > { %v1945_v46 = vld [vmem:[#allocation5 + $0x130] ss:$8 sps:$4 sm:$0xff]   ;;  %v1953_v48 = vld [vmem:[#allocation5 + $0x124] ss:$8 sps:$4 sm:$0xff]   ;;  %v1912_v50 = vld [vmem:[#allocation5 + $0x20] ss:$8 sps:$4 sm:$0xff]  }
  0x46   : > { %v1959_v51 = vld [vmem:[#allocation5 + $0x114] ss:$8 sps:$4 sm:$0xff]   ;;  %v1957_v53 = vld [vmem:[#allocation5 + $0x110] ss:$8 sps:$4 sm:$0xff]   ;;  %v1920_v55 = vld [vmem:[#allocation5 + $0x4] ss:$8 sps:$4 sm:$0xff]  }
  0x47   : > { %1782 = vmatpush3.bf16.msra.mxu1 %v1883_v15  ;;  %556 = vmatpush1.bf16.msra.mxu0 %v1884_v16  ;;  %v1917_v52 = vld [vmem:[#allocation5 + $0x14] ss:$8 sps:$4 sm:$0xff]   ;;  %v1915_v54 = vld [vmem:[#allocation5 + $0x10] ss:$8 sps:$4 sm:$0xff]   ;;  %v1918_v56 = vld [vmem:[#allocation5] ss:$8 sps:$4 sm:$0xff]  }
  0x48   : > { %1783 = vmatprep.subr.bf16.mxu1 %v2165_v0  ;;  %557 = vmatprep.subr.bf16.mxu0 %v1885_v17  ;;  %v1926_v57 = vld [vmem:[#allocation5 + $0xf4] ss:$8 sps:$4 sm:$0xff]   ;;  %v1924_v58 = vld [vmem:[#allocation5 + $0xf0] ss:$8 sps:$4 sm:$0xff]   ;;  %v1932_v59 = vld [vmem:[#allocation5 + $0xe4] ss:$8 sps:$4 sm:$0xff]  }
  0x49   : > { %v1930_v60 = vld [vmem:[#allocation5 + $0xe0] ss:$8 sps:$4 sm:$0xff]   ;;  %v1938_v61 = vld [vmem:[#allocation5 + $0xd4] ss:$8 sps:$4 sm:$0xff]   ;;  %v1936_v62 = vld [vmem:[#allocation5 + $0xd0] ss:$8 sps:$4 sm:$0xff]  }
  0x4a   : > { %v1944_v63 = vld [vmem:[#allocation5 + $0xc4] ss:$8 sps:$4 sm:$0xff]   ;;  %v1950_v2 = vld [vmem:[#allocation5 + $0xb4] ss:$8 sps:$4 sm:$0xff]   ;;  %v1948_v3 = vld [vmem:[#allocation5 + $0xb0] ss:$8 sps:$4 sm:$0xff]  }
  0x4b   : > { %1784 = vmatpush3.bf16.msra.mxu1 %v1887_v18  ;;  %558 = vmatpush1.bf16.msra.mxu0 %v1888_v19  ;;  %v1956_v4 = vld [vmem:[#allocation5 + $0xa4] ss:$8 sps:$4 sm:$0xff]   ;;  %v1954_v5 = vld [vmem:[#allocation5 + $0xa0] ss:$8 sps:$4 sm:$0xff]   ;;  %v1962_v6 = vld [vmem:[#allocation5 + $0x94] ss:$8 sps:$4 sm:$0xff]  }
  0x4c   : > { %1785 = vmatprep.subr.bf16.mxu1 %v2165_v0  ;;  %559 = vmatprep.subr.bf16.mxu0 %v1889_v20  ;;  %v1965_v7 = vld [vmem:[#allocation5 + $0x104] ss:$8 sps:$4 sm:$0xff]   ;;  %v1960_v8 = vld [vmem:[#allocation5 + $0x90] ss:$8 sps:$4 sm:$0xff]   ;;  %v1963_v9 = vld [vmem:[#allocation5 + $0x100] ss:$8 sps:$4 sm:$0xff]  }
  0x4d   : > { %v1968_v10 = vld [vmem:[#allocation5 + $0x84] ss:$8 sps:$4 sm:$0xff]   ;;  %v1966_v11 = vld [vmem:[#allocation5 + $0x80] ss:$8 sps:$4 sm:$0xff]   ;;  %v1971_v12 = vld [vmem:[%s2525_s6 + $0x74] ss:$8 sps:$4 sm:$0xff]  }
  0x4e   : > { %v2334_v14 = vshrl.u32 %v404_v13, 7  ;;  %v402_v16 = vld [vmem:[%s2521_s2] sm:$0x7]  ;;  %vm1439_vm2 = vcmask 1043456   ;;  %s352_s13 = sand.u32 1, %s2149_s28   ;;  %s1736_s17 = sshll.u32 %s2235_s9, 7 }
  0x4f   : > { %1786 = vmatpush3.bf16.msra.mxu1 %v1891_v21  ;;  %560 = vmatpush1.bf16.msra.mxu0 %v1892_v22  ;;  %v2023_v13 = vld [vmem:[%s2329_s12 + $0x60] sm:$0xff]   ;;  %s1609_s18 = sshll.u32 %s352_s13, 3  ;;  %s2480_s22 = scalar_lea.hbm %s2527_s8, %s1736_s17 }
  0x50   : > { %1787 = vmatprep.subr.bf16.mxu1 %v2165_v0  ;;  %561 = vmatprep.subr.bf16.mxu0 %v1893_v23  ;;  %v414_v15 = vsub.s32 2, %v2334_v14  ;;  %v406_v17 = vsub.s32 0, %v2334_v14  ;;  %v410_v18 = vsub.s32 1, %v2334_v14  ;;  %v2031_v14 = vld [vmem:[%s2329_s12 + $0x40] sm:$0xff]   ;;  %s354_s21 = scalar_lea.vmem [#allocation7], %s1609_s18  ;;  %s1483_s24 = scalar_lea.sflag [#allocation4], %s352_s13 }
  0x51   : > { %s1496_s23 = sshll.u32 %s354_s21, 4  ;;  %s2168_s9 = smov [#allocation7]   ;;  %s2475_s23 = int_to_ptr.vmem [resolvable:$true] %s1496_s23 }
  0x52   : > { %v415_v19 = vrot.slane %v402_v16, %v414_v15  ;;  %v407_v20 = vrot.slane %v402_v16, %v406_v17  ;;  %v411_v22 = vrot.slane %v402_v16, %v410_v18  ;;  %v2024_v15 = vld [vmem:[%s2329_s12 + $0x20] sm:$0xff]   ;;  %v2025_v16 = vld [vmem:[%s2329_s12 + $0x58] sm:$0xff]   ;;  %s2089_s25 = scalar_lea.vmem %s2475_s23, 128 }
  0x53   : > { %1788 = vmatpush3.bf16.msra.mxu1 %v1895_v24  ;;  %562 = vmatpush1.bf16.msra.mxu0 %v1896_v25  ;;  %p2090_p12 = scmp.ne.s32.totalorder %s2475_s23, %s2089_s25 }
  0x54   : > { %975 = vmatprep.subr.bf16.mxu1 %v1923_v28  ;;  %934 = vmatprep.subr.bf16.mxu0 %v1899_v26 }
  0x55   : > { %p2091_p7 = pnand %p2090_p12, %p2252_p5 }
  0x56   : > { %1790 = vmatmul.mubr.bf16.vlgmr.msra.gmra.mxu1 %v369_v27  ;;  %580 = vmatmul.mubr.bf16.vlgmr.msra.gmra.mxu0 %v369_v27 }
  0x57   : > { %976 = vmatpush1.bf16.msra.mxu1 %v1921_v29  ;;  %935 = vmatpush1.bf16.msra.mxu0 %v1897_v30  ;;  %p2092_p8 = pneg %p2091_p7 }
  0x58   : > { %977 = vmatprep.subr.bf16.mxu1 %v1929_v32  ;;  %936 = vmatprep.subr.bf16.mxu0 %v1902_v31  ;;  %v1969_v31 = vld [vmem:[%s2525_s6 + $0x70] ss:$8 sps:$4 sm:$0xff]  }
  0x59   : > { %1007 = vmatprep.mubr.bf16.mxu1 %v2167_v1  ;;  %v1942_v1 = vld [vmem:[#allocation5 + $0xc0] ss:$8 sps:$4 sm:$0xff]  }
  0x5b   : > { %978 = vmatpush1.bf16.msra.mxu1 %v1927_v34  ;;  %937 = vmatpush1.bf16.msra.mxu0 %v1900_v33 }
  0x5c   : > { %979 = vmatprep.subr.bf16.mxu1 %v1935_v35  ;;  %938 = vmatprep.subr.bf16.mxu0 %v1905_v36  ;;  %v1974_v35 = vld [vmem:[%s2525_s6 + $0x64] ss:$8 sps:$4 sm:$0xff]  }
  0x5f   : > { %980 = vmatpush1.bf16.msra.mxu1 %v1933_v38  ;;  %939 = vmatpush1.bf16.msra.mxu0 %v1903_v37 }
  0x60   : > { %981 = vmatprep.subr.bf16.mxu1 %v1941_v39  ;;  %940 = vmatprep.subr.bf16.mxu0 %v1908_v40  ;;  %v1972_v40 = vld [vmem:[%s2525_s6 + $0x60] ss:$8 sps:$4 sm:$0xff]  }
  0x63   : > { %982 = vmatpush1.bf16.msra.mxu1 %v1939_v42  ;;  %941 = vmatpush1.bf16.msra.mxu0 %v1906_v41  ;;  %v1977_v42 = vld [vmem:[%s2525_s6 + $0x54] ss:$8 sps:$4 sm:$0xff]  }
  0x64   : > { %983 = vmatprep.subr.bf16.mxu1 %v1947_v43  ;;  %942 = vmatprep.subr.bf16.mxu0 %v1911_v44  ;;  %v1975_v43 = vld [vmem:[%s2525_s6 + $0x50] ss:$8 sps:$4 sm:$0xff]   ;;  %v1980_v44 = vld [vmem:[%s2525_s6 + $0x44] ss:$8 sps:$4 sm:$0xff]  }
  0x67   : > { %984 = vmatpush1.bf16.msra.mxu1 %v1945_v46  ;;  %943 = vmatpush1.bf16.msra.mxu0 %v1909_v45  ;;  %v1978_v45 = vld [vmem:[%s2525_s6 + $0x40] ss:$8 sps:$4 sm:$0xff]   ;;  %v1983_v46 = vld [vmem:[%s2525_s6 + $0x34] ss:$8 sps:$4 sm:$0xff]  }
  0x68   : > { %985 = vmatprep.subr.bf16.mxu1 %v1953_v48  ;;  %944 = vmatprep.subr.bf16.mxu0 %v1914_v47  ;;  %v1981_v47 = vld [vmem:[%s2525_s6 + $0x30] ss:$8 sps:$4 sm:$0xff]   ;;  %v1986_v48 = vld [vmem:[%s2525_s6 + $0x24] ss:$8 sps:$4 sm:$0xff]  }
  0x6b   : > { %986 = vmatpush1.bf16.msra.mxu1 %v1951_v49  ;;  %945 = vmatpush1.bf16.msra.mxu0 %v1912_v50  ;;  %v1984_v49 = vld [vmem:[%s2525_s6 + $0x20] ss:$8 sps:$4 sm:$0xff]   ;;  %v1989_v50 = vld [vmem:[%s2525_s6 + $0x14] ss:$8 sps:$4 sm:$0xff]  }
  0x6c   : > { %987 = vmatprep.subr.bf16.mxu1 %v1959_v51  ;;  %946 = vmatprep.subr.bf16.mxu0 %v1917_v52  ;;  %v1987_v51 = vld [vmem:[%s2525_s6 + $0x10] ss:$8 sps:$4 sm:$0xff]   ;;  %v1992_v52 = vld [vmem:[%s2525_s6 + $0x4] ss:$8 sps:$4 sm:$0xff]  }
  0x6f   : > { %988 = vmatpush1.bf16.msra.mxu1 %v1957_v53  ;;  %947 = vmatpush1.bf16.msra.mxu0 %v1915_v54  ;;  %v1990_v53 = vld [vmem:[%s2525_s6] ss:$8 sps:$4 sm:$0xff]   ;;  %v1995_v54 = vld [vmem:[%s2525_s6 + $0xf4] ss:$8 sps:$4 sm:$0xff]  }
  0x70   : > { %948 = vmatprep.subr.bf16.mxu0 %v1920_v55  ;;  %989 = vmatprep.subr.bf16.mxu1 %v1965_v7  ;;  %v1993_v55 = vld [vmem:[%s2525_s6 + $0xf0] ss:$8 sps:$4 sm:$0xff]  }
  0x71   : > { %v2017_v7 = vld [vmem:[%s2329_s12 + $0x78] sm:$0xff]  }
  0x73   : > { %949 = vmatpush1.bf16.msra.mxu0 %v1918_v56  ;;  %990 = vmatpush1.bf16.msra.mxu1 %v1963_v9  ;;  %v1998_v56 = vld [vmem:[%s2525_s6 + $0xe4] ss:$8 sps:$4 sm:$0xff]   ;;  %v2019_v9 = vld [vmem:[%s2329_s12 + $0x70] sm:$0xff]  }
  0x74   : > { %950 = vmatprep.subr.bf16.mxu0 %v1926_v57  ;;  %1212 = vmatprep.subr.bf16.mxu1 %v1971_v12  ;;  %v1996_v57 = vld [vmem:[%s2525_s6 + $0xe0] ss:$8 sps:$4 sm:$0xff]  }
  0x75   : > { %v2022_v12 = vld [vmem:[%s2329_s12 + $0x28] sm:$0xff]  }
  0x77   : > { %951 = vmatpush2.bf16.msra.mxu0 %v1924_v58  ;;  %v2001_v58 = vld [vmem:[%s2525_s6 + $0xd4] ss:$8 sps:$4 sm:$0xff]  }
  0x78   : > { %952 = vmatprep.subr.bf16.mxu0 %v1932_v59  ;;  %v1999_v59 = vld [vmem:[%s2525_s6 + $0xd0] ss:$8 sps:$4 sm:$0xff]  }
  0x7b   : > { %953 = vmatpush2.bf16.msra.mxu0 %v1930_v60  ;;  %v2004_v60 = vld [vmem:[%s2525_s6 + $0xc4] ss:$8 sps:$4 sm:$0xff]  }
  0x7c   : > { %954 = vmatprep.subr.bf16.mxu0 %v1938_v61  ;;  %v2002_v61 = vld [vmem:[%s2525_s6 + $0xc0] ss:$8 sps:$4 sm:$0xff]  }
  0x7f   : > { %955 = vmatpush2.bf16.msra.mxu0 %v1936_v62  ;;  %v2007_v62 = vld [vmem:[%s2525_s6 + $0xb4] ss:$8 sps:$4 sm:$0xff]  }
  0x80   : > { %956 = vmatprep.subr.bf16.mxu0 %v1944_v63  ;;  %v2005_v63 = vld [vmem:[%s2525_s6 + $0xb0] ss:$8 sps:$4 sm:$0xff]  }
  0x83   : > { %957 = vmatpush2.bf16.msra.mxu0 %v1942_v1  ;;  %v2010_v1 = vld [vmem:[%s2525_s6 + $0xa4] ss:$8 sps:$4 sm:$0xff]  }
  0x84   : > { %958 = vmatprep.subr.bf16.mxu0 %v1950_v2  ;;  %v2008_v2 = vld [vmem:[%s2525_s6 + $0xa0] ss:$8 sps:$4 sm:$0xff]  }
  0x87   : > { %959 = vmatpush2.bf16.msra.mxu0 %v1948_v3  ;;  %v2013_v3 = vld [vmem:[%s2525_s6 + $0x94] ss:$8 sps:$4 sm:$0xff]  }
  0x88   : > { %960 = vmatprep.subr.bf16.mxu0 %v1956_v4  ;;  %v2011_v4 = vld [vmem:[%s2525_s6 + $0x90] ss:$8 sps:$4 sm:$0xff]  }
  0x8b   : > { %961 = vmatpush2.bf16.msra.mxu0 %v1954_v5  ;;  %v2016_v5 = vld [vmem:[%s2525_s6 + $0x84] ss:$8 sps:$4 sm:$0xff]  }
  0x8c   : > { %962 = vmatprep.subr.bf16.mxu0 %v1962_v6  ;;  %v2014_v6 = vld [vmem:[%s2525_s6 + $0x80] ss:$8 sps:$4 sm:$0xff]  }
  0x8f   : > { %963 = vmatpush2.bf16.msra.mxu0 %v1960_v8  ;;  %v2018_v8 = vld [vmem:[%s2329_s12 + $0x38] sm:$0xff]  }
  0x90   : > { %964 = vmatprep.subr.bf16.mxu0 %v1968_v10  ;;  %v2020_v10 = vld [vmem:[%s2329_s12 + $0x30] sm:$0xff]  }
  0x93   : > { %965 = vmatpush2.bf16.msra.mxu0 %v1966_v11  ;;  %v2021_v11 = vld [vmem:[%s2329_s12 + $0x68] sm:$0xff]  }
  0x94   : > { %1749 = vmatprep.subr.bf16.mxu0 %v2017_v7 }
 0x116   : > { %v622_v21 = vpop.f32.mrf.mxu1  ;;  %v581_v24 = vpop.f32.mrf.mxu0 }
 0x117   : > { %v623_v23 = vadd.f32 %v622_v21, %v415_v19  ;;  %v582_v25 = vadd.f32 %v581_v24, %v407_v20  ;;  %v2026_v19 = vld [vmem:[%s2329_s12 + $0x18] sm:$0xff]   ;;  %v2027_v20 = vld [vmem:[%s2329_s12 + $0x50] sm:$0xff]   ;;  %v682_v24 = vld [vmem:[%s2523_s4] sm:$0x3] }
 0x118   : > { %v1791_v26 = vpop.f32.mrf.mxu1  ;;  %v583_v28 = vpop.f32.mrf.mxu0  ;;  %v2028_v21 = vld [vmem:[%s2329_s12 + $0x10] sm:$0xff]  }
 0x119   : > { %v630_v27 = vmax.f32 %v623_v23, 0.0  ;;  %v584_v29 = vadd.f32 %v583_v28, %v411_v22  ;;  %v628_v33 = vmax.f32 %v582_v25, 0.0  ;;  %v2029_v22 = vld [vmem:[%s2329_s12 + $0x48] sm:$0xff]   ;;  %v687_v26 = vrot.slane %v682_v24, %v406_v17 }
 0x11a   : > { %v625_v30 = vpop.f32.mrf.mxu1  ;;  %v585_v34 = vpop.f32.mrf.mxu0  ;;  %v2030_v23 = vld [vmem:[%s2329_s12 + $0x8] sm:$0xff]   ;;  %v691_v28 = vrot.slane %v682_v24, %v410_v18  ;;  %v2032_v18 = vld [vmem:[%s2329_s12] sm:$0xff]   ;;  %s2093_s12 = sshll.u32 %s2168_s9, 4  ;;  %s2094_s12 = int_to_ptr.vmem [resolvable:$false] %s2093_s12 }
 0x11b   : > { %v633_v32 = vpack.c.bf16 %v630_v27, %v630_v27  ;;  %v629_v36 = vmax.f32 %v584_v29, 0.0  ;;  %v631_v41 = vpack.c.bf16 %v628_v33, %v628_v33  ;;  %s2095_s26 = scalar_lea.vmem %s2094_s12, 256  ;;  %p2096_p11 = scmp.lt.s32.totalorder %s2475_s23, %s2094_s12 }
 0x11c   : > { %v1792_v37 = vpop.f32.mrf.mxu1  ;;  %v586_v38 = vpop.f32.mrf.mxu0  ;;  %p2097_p0 = scmp.lt.s32.totalorder %s2095_s26, %s2089_s25 }
 0x11d   : > { %1008 = vmatmul.mubr.bf16.vlgmr.msra.gmra.mxu1 %v633_v32  ;;  %v632_v39 = vpack.c.bf16 %v629_v36, %v629_v36 }
 0x11e   : > { %1213 = vmatpush1.bf16.msra.mxu1 %v1969_v31  ;;  %p2098_p1 = por %p2097_p0, %p2096_p11 }
 0x11f   : > { %1214 = vmatprep.subr.bf16.mxu1 %v1974_v35  ;;  %966 = vmatprep.mubr.bf16.mxu0 %v632_v39 }
 0x120   : > { %967 = vmatmul.mubr.bf16.vlgmr.msra.gmra.mxu0 %v631_v41  ;;  %p2099_p3 = pnand %p2098_p1, %p2092_p8 }
 0x121   : > { %1750 = vmatpush3.bf16.msra.mxu0 %v2018_v8 }
 0x122   : > { %1215 = vmatpush1.bf16.msra.mxu1 %v1972_v40  ;;  %1751 = vmatprep.subr.bf16.mxu0 %v2019_v9 }
 0x123   : > { %1216 = vmatprep.subr.bf16.mxu1 %v1977_v42 }
 0x125   : > { %1752 = vmatpush3.bf16.msra.mxu0 %v2020_v10 }
 0x126   : > { %1217 = vmatpush1.bf16.msra.mxu1 %v1975_v43  ;;  %1753 = vmatprep.subr.bf16.mxu0 %v2021_v11 }
 0x127   : > { %1218 = vmatprep.subr.bf16.mxu1 %v1980_v44 }
 0x129   : > { %1754 = vmatpush3.bf16.msra.mxu0 %v2022_v12 }
 0x12a   : > { %1219 = vmatpush1.bf16.msra.mxu1 %v1978_v45  ;;  %1755 = vmatprep.subr.bf16.mxu0 %v2023_v13 }
 0x12b   : > { %1220 = vmatprep.subr.bf16.mxu1 %v1983_v46 }
 0x12d   : > { %1756 = vmatpush3.bf16.msra.mxu0 %v2024_v15 }
 0x12e   : > { %1221 = vmatpush1.bf16.msra.mxu1 %v1981_v47  ;;  %1757 = vmatprep.subr.bf16.mxu0 %v2025_v16 }
 0x12f   : > { %1222 = vmatprep.subr.bf16.mxu1 %v1986_v48 }
 0x131   : > { %1758 = vmatpush3.bf16.msra.mxu0 %v2026_v19 }
 0x132   : > { %1223 = vmatpush1.bf16.msra.mxu1 %v1984_v49  ;;  %1759 = vmatprep.subr.bf16.mxu0 %v2027_v20 }
 0x133   : > { %1224 = vmatprep.subr.bf16.mxu1 %v1989_v50 }
 0x135   : > { %1760 = vmatpush3.bf16.msra.mxu0 %v2028_v21 }
 0x136   : > { %1225 = vmatpush1.bf16.msra.mxu1 %v1987_v51  ;;  %1761 = vmatprep.subr.bf16.mxu0 %v2029_v22 }
 0x137   : > { %1226 = vmatprep.subr.bf16.mxu1 %v1992_v52 }
 0x139   : > { %1762 = vmatpush3.bf16.msra.mxu0 %v2030_v23 }
 0x13a   : > { %1227 = vmatpush1.bf16.msra.mxu1 %v1990_v53  ;;  %1763 = vmatprep.subr.bf16.mxu0 %v2031_v14 }
 0x13b   : > { %1228 = vmatprep.subr.bf16.mxu1 %v1995_v54 }
 0x13d   : > { %1764 = vmatpush3.bf16.msra.mxu0 %v2032_v18 }
 0x13e   : > { %1229 = vmatpush2.bf16.msra.mxu1 %v1993_v55  ;;  %1793 = vmatprep.subr.bf16.mxu0 %v2165_v0 }
 0x13f   : > { %1230 = vmatprep.subr.bf16.mxu1 %v1998_v56 }
 0x142   : > { %1231 = vmatpush2.bf16.msra.mxu1 %v1996_v57 }
 0x143   : > { %1232 = vmatprep.subr.bf16.mxu1 %v2001_v58 }
 0x146   : > { %1233 = vmatpush2.bf16.msra.mxu1 %v1999_v59 }
 0x147   : > { %1234 = vmatprep.subr.bf16.mxu1 %v2004_v60 }
 0x14a   : > { %1235 = vmatpush2.bf16.msra.mxu1 %v2002_v61 }
 0x14b   : > { %1236 = vmatprep.subr.bf16.mxu1 %v2007_v62 }
 0x14e   : > { %1237 = vmatpush2.bf16.msra.mxu1 %v2005_v63 }
 0x14f   : > { %1238 = vmatprep.subr.bf16.mxu1 %v2010_v1 }
 0x152   : > { %1239 = vmatpush2.bf16.msra.mxu1 %v2008_v2 }
 0x153   : > { %1240 = vmatprep.subr.bf16.mxu1 %v2013_v3 }
 0x156   : > { %1241 = vmatpush2.bf16.msra.mxu1 %v2011_v4 }
 0x157   : > { %1242 = vmatprep.subr.bf16.mxu1 %v2016_v5 }
 0x15a   : > { %1243 = vmatpush2.bf16.msra.mxu1 %v2014_v6 }
 0x1dd   : > { %v1009_v25 = vpop.f32.mrf.mxu1 }
 0x1df   : > { %v1011_v27 = vpop.f32.mrf.mxu1 }
 0x1e0   : > { %v968_v29 = vpop.f32.mrf.mxu0 }
 0x1e1   : > { %v1013_v30 = vpop.f32.mrf.mxu1  ;;  %v969_v31 = vadd.f32 %v968_v29, %v687_v26 }
 0x1e2   : > { %v970_v32 = vpop.f32.mrf.mxu0 }
 0x1e3   : > { %v1014_v33 = vpop.f32.mrf.mxu1  ;;  %v1010_v34 = vadd.f32 %v1009_v25, %v969_v31  ;;  %v971_v35 = vadd.f32 %v970_v32, %v691_v28 }
 0x1e4   : > { %v972_v36 = vpop.f32.mrf.mxu0 }
 0x1e5   : > { %v1012_v37 = vadd.f32 %v1011_v27, %v971_v35  ;;  %v1016_v38 = vmax.f32 %v1010_v34, 0.0 }
 0x1e6   : > { %v973_v39 = vpop.f32.mrf.mxu0 }
 0x1e7   : > { %v1017_v40 = vmax.f32 %v1012_v37, 0.0  ;;  %v1018_v17 = vpack.c.bf16 %v1016_v38, %v1016_v38 }
 0x1e9   : > { %v1019_v41 = vpack.c.bf16 %v1017_v40, %v1017_v40 }
 0x1eb   : > { %1244 = vmatprep.mubr.bf16.mxu1 %v1019_v41 }
 0x1ec   : > { %1245 = vmatmul.mubr.bf16.vlgmr.msra.gmra.mxu1 %v1018_v17 }
 0x2ac   : > { %v1246_v42 = vpop.f32.mrf.mxu1 }
 0x2ad   : > { %v1253_v45 = vpack.c.bf16 %v1246_v42, %v1246_v42 }
 0x2ae   : > { %v1248_v43 = vpop.f32.mrf.mxu1 }
 0x2af   : > { %v1254_v44 = vpack.c.bf16 %v1248_v43, %v1248_v43 }
 0x2b0   : > { %v1250_v46 = vpop.f32.mrf.mxu1 }
 0x2b1   : > { %1415 = vmatprep.mubr.bf16.mxu0 %v1254_v44 }
 0x2b2   : > { %v1251_v47 = vpop.f32.mrf.mxu1  ;;  %1416 = vmatmul.mubr.bf16.vlgmr.msra.gmra.mxu0 %v1253_v45 }
 0x2b3   : > { %1795 = vmatprep.mubr.msk.f32.mxu0 %vm2166_vm0, %v2165_v0  ;;  %v1435_v0 = vld [vmem:[%s367_s10] sm:$0xf] }
 0x2b4   : > { %v1441_v59 = vsel %vm1439_vm2, %v1435_v0, 0 }
 0x2b5   : > { %1794 = vmatpush3.bf16.msra.mxu0 %v1441_v59 }
 0x372   : > { %v1765_v48 = vpop.f32.mrf.mxu0 }
 0x374   : > { %v1766_v49 = vpop.f32.mrf.mxu0 }
 0x375   : > { %v1767_v50 = vadd.f32 %v1766_v49, %v1765_v48 }
 0x376   : > { %v1768_v51 = vpop.f32.mrf.mxu0 }
 0x377   : > { %v1424_v52 = vsel %vm1423_vm1, %v1767_v50, -inf }
 0x378   : > { %v1769_v53 = vpop.f32.mrf.mxu0  ;;  %1425 = vmax.xlane.f32.xlu0 %v1424_v52 }
 0x401   : > { %v1426_v54 = vpop.xlane.xlu0 %1425 }
 0x402   : > { %v1427_v55 = vsub.f32 %v1767_v50, %v1426_v54 }
 0x404   : > { %v1428_v56 = vmul.f32 1.442695, %v1427_v55 }
 0x406   : > { %2033 = vpow2.f32 %v1428_v56 }
 0x413   : > { %v2034_v57 = vpop.eup %2033 }
 0x414   : > { %v1430_v58 = vsel %vm1423_vm1, %v2034_v57, 0.0 }
 0x415   : > { %1431 = vadd.xlane.f32.xlu0 %v1430_v58 }
 0x49e   : > { %v1432_v60 = vpop.xlane.xlu0 %1431 }
 0x49f   : > { %2035 = vrcp.f32 %v1432_v60 }
 0x4ac   : > { %v2036_v61 = vpop.eup %2035 }
 0x4ad   : > { %v1434_v62 = vmul.f32 %v2036_v61, %v2034_v57 }
 0x4af   : > { %1796 = vmatmul.mubr.msk.f32.vlgmr.msra.gmra.mxu0 %vm1423_vm1, %v1434_v62 }
 0x56f   : > { %v1477_v63 = vpop.f32.mrf.mxu0 }
 0x570   : > { %1481 = vst [vmem:[%s354_s21] sm:$0xff] %v1477_v63 }
 0x571   : > { %v1797_v1 = vpop.f32.mrf.mxu0 }
 0x572   : > { %2102 = shalt.err (!%p2099_p3)
}
 0x573   : > { %s2103_s10 = scalar_lea.hbm %s2480_s22, 128  ;;  %s2107_s21 = scalar_lea.hbm %s2527_s8, 256 }
 0x574   : > { %p2104_p2 = scmp.ne.s32.totalorder %s2480_s22, %s2103_s10  ;;  %p2108_p6 = scmp.lt.s32.totalorder %s2480_s22, %s2527_s8 }
 0x575   : > { %p2109_p9 = scmp.lt.s32.totalorder %s2107_s21, %s2103_s10 }
 0x576   : > { %p2105_p4 = pnand %p2104_p2, %p2252_p5 }
 0x577   : > { %p2110_p10 = por %p2109_p9, %p2108_p6 }
 0x578   : > { %p2106_p13 = pneg %p2105_p4 }
 0x57a   : > { %p2111_p12 = pnand %p2110_p10, %p2106_p13 }
 0x57c   : > { %2114 = shalt.err (!%p2111_p12)
}
 0x57d   : > { %1806 = dma.vmem_to_hbm [thread:$0]  (%p2252_p5), %s2475_s23, 128, %s2480_s22, %s1483_s24  }
 0x57e PF: > { %p1823_p7 = scmp.ge.s32.totalorder %s2157_s30, 2  ;;  %s1508_s19 = sand.u32 1, %s2145_s27  }
 0x57f   : > { %p2537_p8 = scmp.ne.s32.totalorder %s2530_s16, 0  ;;  %s1509_s25 = scalar_lea.sflag [#allocation4], %s1508_s19 }
 0x581   : > { %p1816_p11 = pnand %p1823_p7, %p2537_p8 }
 0x583   : > { %p1817_p0 = pneg %p1816_p11 }
 0x585   : > { %2140 = dma.done.wait (%p1817_p0), %s1509_s25, 128  }
 0x586   : > { %2142 = vsyncadd (%p1817_p0), %s1509_s25, 4294967168  ;;  %p20_p1 = scmp.ge.s32.totalorder %s2239_s11, 4   ;;  %s2538_s27 = smov %s2149_s28 }
 0x587   : > { %s2539_s28 = smov %s2153_s29  ;;  %s2540_s29 = smov %s2250_s14 }
 0x588   : > { %s2541_s30 = smov %s2239_s11  ;;  %22 = sbr.rel (!%p20_p1) target bundleno = 5 (0x5), region = 102 }
 0x58d   :  { %1514 = vsyncpa [#allocation3], 1 }
 0x58e   :  { %1516 = vsyncpa [#allocation3 + $0x1], 1 }
 0x58f   :  { %1517 = vsyncpa [#allocation6], 1 }
 0x590   :  { %1518 = vsyncpa [#allocation4], 1 }
 0x591   :  { %1520 = vsyncpa [#allocation4 + $0x1], 1 }

</bundles_post_ra>
